<compile_context>
chip_gen: v7x
topology: tpu7x:2x2x1
jax: 0.10.0
libtpu: 0.0.40
codegen_flags: <defaults>
</compile_context>

<pallas_src>
import math
from functools import partial

import jax
import jax.numpy as jnp
from jax import lax
from jax.experimental import pallas as pl
from jax.experimental.pallas import tpu as pltpu


def transition_kernel(x_ref, scale_ref, bias_ref, wt_ref, out_ref, acc_ref, *, H, W):
    """Grid = (batch n, cout tile j, cin tile k); k is the reduction axis.

    x_ref     : (1, TC, H*W)   NCHW channel tile (free reshape of the input)
    scale_ref : (TC, 1)        folded BN scale  = gamma / sqrt(var + eps)   (f32)
    bias_ref  : (TC, 1)        folded BN bias   = beta - mean * scale       (f32)
    wt_ref    : (TC, TCO)      1x1 conv weight, pre-transposed, 0.25 pool factor folded
    out_ref   : (1, TCO, M)    NCHW output tile (M = (H/2)*(W/2))
    acc_ref   : (H*W, TCO)     f32 accumulator, channels-last (spatial on sublanes)
    """
    k = pl.program_id(2)
    nk = pl.num_programs(2)

    @pl.when(k == 0)
    def _init():
        acc_ref[...] = jnp.zeros_like(acc_ref)

    # BN (eval) + ReLU on the (TC, H*W) tile; scale/bias broadcast along lanes.
    v = jnp.maximum(x_ref[0] * scale_ref[...] + bias_ref[...], 0.0)      # (TC, H*W)

    # 1x1-conv partial product, accumulated directly channels-last:
    #   acc(H*W, TCO) += v^T @ wt   (TN dot_general -> no big post-matmul transpose)
    acc_ref[...] += lax.dot_general(
        v, wt_ref[...],
        dimension_numbers=(((0,), (0,)), ((), ())),
        preferred_element_type=jnp.float32)

    @pl.when(k == nk - 1)
    def _finalize():
        Hh, Wh = H // 2, W // 2
        tco = out_ref.shape[1]

        # 2x2 average pool (the 1/4 factor already lives in wt).
        # W-pool: accumulator rows are s = h*W + w; W is even so row parity ==
        # w parity -> two sublane-aligned stride-2 views give w-even / w-odd,
        # each with rows ordered as h*Wh + wh.  No reshape, no retiling.
        ev = acc_ref[pl.ds(0, H * Wh, stride=2), :]                      # (H*Wh, TCO)
        od = acc_ref[pl.ds(1, H * Wh, stride=2), :]
        ws = ev + od                                                     # rows = h*Wh + wh

        # H-pool: pair row blocks h = 2hh and h = 2hh + 1.
        # Second-minor split is 2*Wh == W (free relayout when W % 8 == 0).
        # TODO(synk): pad Wh to a multiple of 8 in a VMEM scratch for DenseNet
        # stages with W = 28 / 14 to avoid the retiling reshape there.
        ws = ws.reshape(Hh, 2 * Wh, tco)
        p = ws[:, :Wh, :] + ws[:, Wh:, :]                                # (Hh, Wh, TCO)
        pooled = p.reshape(Hh * Wh, tco)                                 # (M, TCO)

        # Small (4x reduced vs. pre-pool) transpose to the NCHW lane layout.
        out_ref[0] = pooled.T.astype(out_ref.dtype)


def _pick_channel_tile(cin, cap=128):
    """Largest multiple-of-8 divisor of cin that is <= cap (else the full dim)."""
    if cin % 8:
        return cin  # must use the full dim to satisfy the (8,128) BlockSpec rule
    best, t = 8, 8
    while t <= min(cap, cin):
        if cin % t == 0:
            best = t
        t += 8
    return best


def _pick_cout_tile(cout, n):
    """Split Cout only when the batch alone cannot feed both v7x TensorCores."""
    if n >= 2 or cout < 256 or cout % 256 != 0:
        return cout
    return 128


def transition_forward(x_nchw, gamma, beta, running_mean, running_var, conv_w,
                       eps=1e-5, channel_tile=None, cout_tile=None):
    """x_nchw: (N, Cin, H, W); conv_w: (Cout, Cin, 1, 1). Returns NCHW output."""
    N, Cin, H, W = x_nchw.shape
    Cout = conv_w.shape[0]
    if (H % 2) or (W % 2):
        raise ValueError("Transition expects even H and W (2x2 average pool).")
    Hh, Wh = H // 2, W // 2
    HW, M = H * W, Hh * Wh
    dt = x_nchw.dtype

    TC = channel_tile if channel_tile is not None else _pick_channel_tile(Cin)
    TCO = cout_tile if cout_tile is not None else _pick_cout_tile(Cout, N)
    assert Cin % TC == 0 and Cout % TCO == 0
    n_k, n_j = Cin // TC, Cout // TCO

    # Fold BatchNorm (eval mode) into per-channel scale/bias; keep them in f32
    # inside the kernel regardless of the activation dtype.
    inv_std = lax.rsqrt(running_var.astype(jnp.float32) + eps)
    scale = (gamma.astype(jnp.float32) * inv_std).reshape(Cin, 1)
    bias = (beta.astype(jnp.float32)
            - running_mean.astype(jnp.float32) * scale[:, 0]).reshape(Cin, 1)
    # Pre-transposed 1x1 conv weight (Cin, Cout) with the exact 0.25 pool factor.
    wt = (0.25 * conv_w[:, :, 0, 0].T).astype(jnp.float32)

    # Free, metadata-only reshape: NCHW is already (N, C, H*W)-contiguous.
    x2 = x_nchw.reshape(N, Cin, HW)

    out3 = pl.pallas_call(
        partial(transition_kernel, H=H, W=W),
        out_shape=jax.ShapeDtypeStruct((N, Cout, M), dt),
        grid=(N, n_j, n_k),
        in_specs=[
            pl.BlockSpec((1, TC, HW), lambda n, j, k: (n, k, 0)),
            pl.BlockSpec((TC, 1), lambda n, j, k: (k, 0)),
            pl.BlockSpec((TC, 1), lambda n, j, k: (k, 0)),
            pl.BlockSpec((TC, TCO), lambda n, j, k: (k, j)),
        ],
        out_specs=pl.BlockSpec((1, TCO, M), lambda n, j, k: (n, j, 0)),
        scratch_shapes=[pltpu.VMEM((HW, TCO), jnp.float32)],
        compiler_params=pltpu.CompilerParams(
            dimension_semantics=("parallel", "parallel", "arbitrary"),
        ),
    )(x2, scale, bias, wt)

    # Free reshape back to NCHW (N, Cout, Hh, Wh).
    return out3.reshape(N, Cout, Hh, Wh)


def transition_reference(x, gamma, beta, mean, var, conv_w, eps=1e-5):
    """Pure-JAX reference mirroring the PyTorch forward (NCHW, eval-mode BN)."""
    inv = 1.0 / jnp.sqrt(var + eps)
    xb = (x - mean[None, :, None, None]) * inv[None, :, None, None]
    xb = xb * gamma[None, :, None, None] + beta[None, :, None, None]
    xb = jnp.maximum(xb, 0.0)
    y = jnp.einsum('nchw,oc->nohw', xb, conv_w[:, :, 0, 0])
    N, C, H, W = y.shape
    return y.reshape(N, C, H // 2, 2, W // 2, 2).mean(axis=(3, 5))


if __name__ == "__main__":
    def check(N, Cin, Cout, H, W, seed, **kw):
        key = jax.random.PRNGKey(seed)
        k1, k2, k3, k4, k5, k6 = jax.random.split(key, 6)
        x = jax.random.normal(k1, (N, Cin, H, W), dtype=jnp.float32)
        gamma = jax.random.uniform(k2, (Cin,), minval=0.5, maxval=1.5, dtype=jnp.float32)
        beta = 0.1 * jax.random.normal(k3, (Cin,), dtype=jnp.float32)
        mean = 0.1 * jax.random.normal(k4, (Cin,), dtype=jnp.float32)
        var = jax.random.uniform(k5, (Cin,), minval=0.5, maxval=1.5, dtype=jnp.float32)
        w = jax.random.normal(k6, (Cout, Cin, 1, 1), dtype=jnp.float32) / math.sqrt(Cin)

        out = jax.block_until_ready(
            transition_forward(x, gamma, beta, mean, var, w, **kw))
        ref = transition_reference(x, gamma, beta, mean, var, w)
        assert out.shape == (N, Cout, H // 2, W // 2), out.shape
        err = float(jnp.max(jnp.abs(out - ref)))
        assert jnp.allclose(out, ref, atol=1e-4, rtol=1e-4), err

    # Small shape consistent with the module (batch=2, channels=4, spatial=16).
    check(2, 4, 2, 16, 16, seed=0)
    # Exercise the Cin-reduction accumulator path (2 K-steps) at batch 1.
    check(1, 16, 8, 8, 8, seed=1, channel_tile=8)

    print("KERNEL_OK")
</pallas_src>

<mosaic_0001>
module attributes {stable_mosaic.version = 11 : i64} {
  func.func @transition_kernel(%arg0: i32, %arg1: i32, %arg2: i32, %arg3: memref<1x4x256xf32, #tpu.memory_space<vmem>>, %arg4: memref<4x1xf32, #tpu.memory_space<vmem>>, %arg5: memref<4x1xf32, #tpu.memory_space<vmem>>, %arg6: memref<4x2xf32, #tpu.memory_space<vmem>>, %arg7: memref<1x2x64xf32, #tpu.memory_space<vmem>>, %arg8: memref<256x2xf32, #tpu.memory_space<vmem>>) attributes {dimension_semantics = [#tpu.dimension_semantics<parallel>, #tpu.dimension_semantics<parallel>, #tpu.dimension_semantics<arbitrary>], iteration_bounds = array<i64: 2, 1, 1>, scalar_prefetch = 0 : i64, scratch_operands = 1 : i64, tpu.core_type = #tpu.core_type<tc>, window_params = [{transform_indices = @transform_0, window_bounds = array<i64: 1, 4, 256>}, {transform_indices = @transform_1, window_bounds = array<i64: 4, 1>}, {transform_indices = @transform_2, window_bounds = array<i64: 4, 1>}, {transform_indices = @transform_3, window_bounds = array<i64: 4, 2>}, {transform_indices = @transform_4, window_bounds = array<i64: 1, 2, 64>}]} {
    %c0_i32 = arith.constant 0 : i32
    %0 = arith.cmpi eq, %arg2, %c0_i32 : i32
    %1 = arith.extui %0 : i1 to i32
    %c0_i32_0 = arith.constant 0 : i32
    %2 = arith.cmpi ne, %1, %c0_i32_0 : i32
    scf.if %2 {
      %cst_16 = arith.constant 0.000000e+00 : f32
      %21 = vector.broadcast %cst_16 : f32 to vector<256x2xf32>
      %c0_17 = arith.constant 0 : index
      %c0_18 = arith.constant 0 : index
      %22 = vector.load %arg8[%c0_17, %c0_18] : memref<256x2xf32, #tpu.memory_space<vmem>>, vector<256x2xf32>
      tpu.vector_store %arg8[%c0_17, %c0_18], %21 {strides = array<i32>} : memref<256x2xf32, #tpu.memory_space<vmem>>, vector<256x2xf32>,
    } else {
    }
    %c0 = arith.constant 0 : index
    %c0_1 = arith.constant 0 : index
    %c0_2 = arith.constant 0 : index
    %3 = vector.load %arg3[%c0, %c0_1, %c0_2] : memref<1x4x256xf32, #tpu.memory_space<vmem>>, vector<1x4x256xf32>
    %4 = vector.shape_cast %3 : vector<1x4x256xf32> to vector<4x256xf32>
    %c0_3 = arith.constant 0 : index
    %c0_4 = arith.constant 0 : index
    %5 = vector.load %arg4[%c0_3, %c0_4] : memref<4x1xf32, #tpu.memory_space<vmem>>, vector<4x1xf32>
    %6 = vector.broadcast %5 : vector<4x1xf32> to vector<4x256xf32>
    %7 = arith.mulf %4, %6 : vector<4x256xf32>
    %c0_5 = arith.constant 0 : index
    %c0_6 = arith.constant 0 : index
    %8 = vector.load %arg5[%c0_5, %c0_6] : memref<4x1xf32, #tpu.memory_space<vmem>>, vector<4x1xf32>
    %9 = vector.broadcast %8 : vector<4x1xf32> to vector<4x256xf32>
    %10 = arith.addf %7, %9 : vector<4x256xf32>
    %cst = arith.constant 0.000000e+00 : f32
    %11 = vector.broadcast %cst : f32 to vector<4x256xf32>
    %12 = arith.maximumf %10, %11 : vector<4x256xf32>
    %c0_7 = arith.constant 0 : index
    %c0_8 = arith.constant 0 : index
    %13 = vector.load %arg8[%c0_7, %c0_8] : memref<256x2xf32, #tpu.memory_space<vmem>>, vector<256x2xf32>
    %c0_9 = arith.constant 0 : index
    %c0_10 = arith.constant 0 : index
    %14 = vector.load %arg6[%c0_9, %c0_10] : memref<4x2xf32, #tpu.memory_space<vmem>>, vector<4x2xf32>
    %cst_11 = arith.constant dense<0.000000e+00> : vector<256x2xf32>
    %15 = tpu.matmul %12, %14, %cst_11 {dimension_numbers = #tpu.dot_dimension_numbers<[0], [0], [1], [1], [0, 1, 1, 1], [], []>} : vector<4x256xf32>, vector<4x2xf32>, vector<256x2xf32> -> vector<256x2xf32>
    %16 = arith.addf %13, %15 : vector<256x2xf32>
    %c0_12 = arith.constant 0 : index
    %c0_13 = arith.constant 0 : index
    %17 = vector.load %arg8[%c0_12, %c0_13] : memref<256x2xf32, #tpu.memory_space<vmem>>, vector<256x2xf32>
    tpu.vector_store %arg8[%c0_12, %c0_13], %16 {strides = array<i32>} : memref<256x2xf32, #tpu.memory_space<vmem>>, vector<256x2xf32>,
    %c0_i32_14 = arith.constant 0 : i32
    %18 = arith.cmpi eq, %arg2, %c0_i32_14 : i32
    %19 = arith.extui %18 : i1 to i32
    %c0_i32_15 = arith.constant 0 : i32
    %20 = arith.cmpi ne, %19, %c0_i32_15 : i32
    scf.if %20 {
      %c0_16 = arith.constant 0 : index
      %c0_17 = arith.constant 0 : index
      %21 = tpu.strided_load %arg8[%c0_16, %c0_17] {strides = array<i32: 2, 1>} : memref<256x2xf32, #tpu.memory_space<vmem>>, vector<128x2xf32>
      %c1 = arith.constant 1 : index
      %c0_18 = arith.constant 0 : index
      %22 = tpu.strided_load %arg8[%c1, %c0_18] {strides = array<i32: 2, 1>} : memref<256x2xf32, #tpu.memory_space<vmem>>, vector<128x2xf32>
      %23 = arith.addf %21, %22 : vector<128x2xf32>
      %24 = vector.shape_cast %23 : vector<128x2xf32> to vector<8x16x2xf32>
      %25 = vector.extract_strided_slice %24 {offsets = [0, 0, 0], sizes = [8, 8, 2], strides = [1, 1, 1]} : vector<8x16x2xf32> to vector<8x8x2xf32>
      %26 = vector.extract_strided_slice %24 {offsets = [0, 8, 0], sizes = [8, 8, 2], strides = [1, 1, 1]} : vector<8x16x2xf32> to vector<8x8x2xf32>
      %27 = arith.addf %25, %26 : vector<8x8x2xf32>
      %28 = vector.shape_cast %27 : vector<8x8x2xf32> to vector<64x2xf32>
      %29 = tpu.transpose %28, [1, 0] : vector<64x2xf32> -> vector<2x64xf32>
      %c0_19 = arith.constant 0 : index
      %c0_20 = arith.constant 0 : index
      %c0_21 = arith.constant 0 : index
      %30 = vector.load %arg7[%c0_19, %c0_20, %c0_21] : memref<1x2x64xf32, #tpu.memory_space<vmem>>, vector<1x2x64xf32>
      %31 = vector.shape_cast %30 : vector<1x2x64xf32> to vector<2x64xf32>
      %32 = vector.shape_cast %29 : vector<2x64xf32> to vector<1x2x64xf32>
      tpu.vector_store %arg7[%c0_19, %c0_20, %c0_21], %32 {strides = array<i32>} : memref<1x2x64xf32, #tpu.memory_space<vmem>>, vector<1x2x64xf32>,
    } else {
    }
    return
  }
  func.func @transform_0(%arg0: i32, %arg1: i32, %arg2: i32) -> (i32, i32, i32) {
    %c0_i32 = arith.constant 0 : i32
    %c0_i32_0 = arith.constant 0 : i32
    return %arg0, %arg2, %c0_i32 : i32, i32, i32
  }
  func.func @transform_1(%arg0: i32, %arg1: i32, %arg2: i32) -> (i32, i32) {
    %c0_i32 = arith.constant 0 : i32
    %c0_i32_0 = arith.constant 0 : i32
    return %arg2, %c0_i32 : i32, i32
  }
  func.func @transform_2(%arg0: i32, %arg1: i32, %arg2: i32) -> (i32, i32) {
    %c0_i32 = arith.constant 0 : i32
    %c0_i32_0 = arith.constant 0 : i32
    return %arg2, %c0_i32 : i32, i32
  }
  func.func @transform_3(%arg0: i32, %arg1: i32, %arg2: i32) -> (i32, i32) {
    %c0_i32 = arith.constant 0 : i32
    return %arg2, %arg1 : i32, i32
  }
  func.func @transform_4(%arg0: i32, %arg1: i32, %arg2: i32) -> (i32, i32, i32) {
    %c0_i32 = arith.constant 0 : i32
    %c0_i32_0 = arith.constant 0 : i32
    return %arg0, %arg1, %c0_i32 : i32, i32, i32
  }
}

</mosaic_0001>

<bundles_post_ra>
// kernel: tpu_custom_call.1
= control target key start
LH: loop header
LB: loop body
LE: loop exit
PB: predicated region body
PF: predicated region fallthrough
CT: control target
= control target key end

     0   :  { %9 = vsyncpa [#allocation4], 0  ;;  %s1755_s0 = inlined_call_operand.hbm [shape: f32[2,4,256], index: 0, kind: input, shape index: {}]   ;;  %s1756_s1 = inlined_call_operand.vmem [shape: f32[4,1], index: 1, kind: input, shape index: {}]   ;;  %s1757_s2 = inlined_call_operand.vmem [shape: f32[4,1], index: 2, kind: input, shape index: {}]   ;;  %s1758_s3 = inlined_call_operand.vmem [shape: f32[4,2], index: 3, kind: input, shape index: {}]   ;;  %s1759_s4 = inlined_call_operand.hbm [shape: f32[2,2,64], index: 4, kind: output, shape index: {}]  }
   0x1   :  { %11 = vsyncpa [#allocation4 + $0x1], 0 }
   0x2   :  { %12 = vsyncpa [#allocation5], 0 }
   0x3   :  { %14 = vsyncpa [#allocation5 + $0x1], 0  ;;  %s1477_s15 = smov 0   ;;  %s1479_s16 = smov 0  }
   0x4   :  { %s1481_s17 = smov 0   ;;  %s1483_s18 = smov 0  }
   0x5   :  { %s1485_s19 = smov 0   ;;  %s1487_s20 = smov 0  }
   0x6 LB: > { %s1131_s21 = sadd.s32 4294967295, %s1445_s20   ;;  %s1132_s22 = sadd.s32 4294967294, %s1445_s20   ;;  %s1445_s20 = sphi %s1487_s20, %s20_s20   ;;  %s1441_s19 = sphi %s1485_s19, %s1775_s19   ;;  %s1437_s18 = sphi %s1483_s18, %s1774_s18   ;;  %s1433_s17 = sphi %s1481_s17, %s1773_s17   ;;  %s1429_s16 = sphi %s1479_s16, %s1772_s16   ;;  %s1425_s15 = sphi %s1477_s15, %s1771_s15  }
   0x7   : > { %s39_s23 = sadd.s32 1, %s1441_s19  ;;  %s48_s24 = sadd.s32 1, %s1433_s17 }
   0x8   : > { %p41_p0 = scmp.ge.s32.totalorder %s39_s23, 2  ;;  %p55_p1 = scmp.ne.s32.totalorder %s1433_s17, %s1429_s16 }
   0x9   : > { %p56_p2 = scmp.eq.s32.totalorder %s1445_s20, 0  ;;  %p61_p3 = scmp.ne.s32.totalorder %s1429_s16, %s1425_s15 }
   0xa   : > { %s1777_s23 = smov (%p41_p0, %s39_s23), 0  ;;  %p62_p5 = scmp.eq.s32.totalorder %s1131_s21, 0 }
   0xb   : > { %p1518_p4 = por %p56_p2, %p55_p1  ;;  %s43_s26 = ssub.s32 %s1441_s19, %s1777_s23 }
   0xc   : > { %p167_p6 = scmp.eq.s32.totalorder %s1131_s21, 1  ;;  %p46_p7 = scmp.eq.s32.totalorder %s43_s26, 0 }
   0xd   : > { %p1524_p8 = por %p62_p5, %p61_p3  ;;  %p173_p10 = scmp.eq.s32.totalorder %s1132_s22, 1 }
   0xe   : > { %p1528_p9 = por %p167_p6, %p55_p1  ;;  %p1279_p13 = scmp.lt.s32.totalorder %s1445_s20, 2 }
   0xf   : > { %s1533_s29 = scalar_select %p46_p7, %s1433_s17, %s48_s24  }
  0x10   : > { %s1763_s28 = scalar_select %p1528_p9, 1, 0 }
  0x11   : > { %p1535_p11 = por %p173_p10, %p61_p3  ;;  %s217_s5 = sand.u32 1, %s1433_s17  }
  0x12   : > { %s1138_s6 = sshll.u32 %s217_s5, 3  ;;  %s1181_s7 = sshll.u32 %s1441_s19, 7 }
  0x13   : > { %s1764_s30 = scalar_select %p1535_p11, 1, 0 }
  0x14   : > { %s1546_s10 = scalar_lea.hbm %s1755_s0, %s1181_s7  ;;  %s221_s11 = scalar_lea.vmem [#allocation3], %s1138_s6 }
  0x15   : > { %s231_s12 = sshll.u32 %s221_s11, 4  ;;  %p1552_p0 = pnand %p1279_p13, %p1518_p4  ;;  %s1548_s12 = int_to_ptr.vmem [resolvable:$true] %s231_s12 }
  0x16   : > { %s218_s14 = scalar_lea.sflag [#allocation4], %s217_s5  ;;  %s1333_s21 = scalar_lea.hbm %s1546_s10, 128 }
  0x17   : > { %p1334_p3 = scmp.ne.s32.totalorder %s1546_s10, %s1333_s21  ;;  %p1335_p5 = pneg %p1552_p0 }
  0x18   : > { %s1338_s25 = scalar_lea.hbm %s1755_s0, 256  ;;  %p1339_p4 = scmp.lt.u32.totalorder %s1546_s10, %s1755_s0 }
  0x19   : > { %p1336_p6 = pnand %p1335_p5, %p1334_p3  ;;  %p1340_p10 = scmp.lt.u32.totalorder %s1338_s25, %s1333_s21 }
  0x1a   : > { %p1342_p12 = scmp.lt.u32.totalorder %s1333_s21, %s1546_s10 }
  0x1b   : > { %p1337_p7 = pneg %p1336_p6  ;;  %p1341_p13 = por %p1340_p10, %p1339_p4 }
  0x1d   : > { %p1343_p1 = por %p1342_p12, %p1341_p13 }
  0x1f   : > { %p1344_p2 = pnand %p1343_p1, %p1337_p7 }
  0x21   : > { %1347 = shalt.err (!%p1344_p2)
}
  0x22   : > { %s1348_s5 = scalar_lea.vmem %s1548_s12, 128  ;;  %s1447_s7 = smov [#allocation3]  }
  0x23   : > { %p1349_p3 = scmp.ne.s32.totalorder %s1548_s12, %s1348_s5  ;;  %s1353_s8 = sshll.u32 %s1447_s7, 4  ;;  %s1354_s8 = int_to_ptr.vmem [resolvable:$false] %s1353_s8 }
  0x24   : > { %s1355_s9 = scalar_lea.vmem %s1354_s8, 256  ;;  %p1356_p9 = scmp.lt.s32.totalorder %s1548_s12, %s1354_s8 }
  0x25   : > { %p1351_p6 = pnand %p1349_p3, %p1335_p5  ;;  %p1357_p4 = scmp.lt.s32.totalorder %s1355_s9, %s1348_s5 }
  0x27   : > { %p1352_p11 = pneg %p1351_p6  ;;  %p1358_p10 = por %p1357_p4, %p1356_p9 }
  0x29   : > { %p1359_p12 = pnand %p1358_p10, %p1352_p11 }
  0x2b   : > { %1362 = shalt.err (!%p1359_p12)
}
  0x2c   : > { %1274 = dma.hbm_to_vmem [thread:$0]  (!%p1552_p0), %s1546_s10, 128, %s1548_s12, %s218_s14  }
  0x2d   : > { %p1766_p1 = scmp.lt.s32.totalorder %s1445_s20, 3  ;;  %p1767_p2 = scmp.ge.s32.totalorder %s1445_s20, 1 }
  0x2f   : > { %p237_p5 = pnand %p1767_p2, %p1766_p1 }
  0x30   : > { %s1588_s11 = sand.u32 (!%p237_p5), 1, %s1429_s16  }
  0x31   : > { %240 = sbr.rel (%p237_p5) target bundleno = 792 (0x318), region = 36  ;;  %s1142_s21 = sshll.u32 (!%p237_p5), %s1588_s11, 3 }
  0x32   : > { %s243_s22 = scalar_lea.sflag (!%p237_p5), [#allocation4], %s1588_s11  ;;  %s246_s24 = scalar_lea.vmem (!%p237_p5), [#allocation3], %s1142_s21 }
  0x38   : > { %1416 = dma.done.wait (%p1524_p8), %s243_s22, 128  }
  0x39   : > { %1418 = vsyncadd (%p1524_p8), %s243_s22, 4294967168  ;;  %v1448_v0 = vmov 0   ;;  %v339_v1 = vld [vmem:[%s1756_s1] sm:$0xf]  ;;  %v1449_v3 = vmov 839922192   ;;  %v347_v5 = vlaneseq }
  0x3a   : > { %1332 = vset.pattern.permute.xlu0 %v1448_v0  ;;  %v353_v2 = vld [vmem:[%s1757_s2] sm:$0xf]  ;;  %v345_v4 = vunpack.c.l.s4 %v1449_v3  ;;  %vm565_vm0 = vcmask 1043456   ;;  %vm305_vm1 = vcmask 15360   ;;  %vm468_vm2 = vcmask 31744   ;;  %s1143_s26 = sshll.u32 %s1588_s11, 1 }
  0x3b   : > { %342 = vperm.xlu0 %1332, %v339_v1   ;;  %v348_v7 = vshrl.u32 %v347_v5, 7  ;;  %v338_v11 = vld [vmem:[%s246_s24] sm:$0xff]  ;;  %v1450_v19 = vmov 0.0   ;;  %s1178_s6 = sshll.u32 %s1437_s18, 5  ;;  %s285_s5 = scalar_lea.vmem [#allocation6], %s1143_s26  ;;  %vm981_vm3 = vcmask 517120  }
  0x3c   : > { %v346_v6 = vunpack.c.0.s8 %v345_v4  ;;  %v400_v17 = vld [vmem:[%s1758_s3] sm:$0xf]  ;;  %307 = vst.msk [vmem:[#allocation2 + $0x8] sm:$0xff] %vm305_vm1, %v1450_v19  ;;  %306 = vst.msk [vmem:[#allocation2] sm:$0xff] %vm305_vm1, %v1450_v19  ;;  %s998_s7 = sshll.u32 %s285_s5, 4  ;;  %s1706_s21 = scalar_lea.hbm %s1759_s4, %s1178_s6  ;;  %s1708_s7 = int_to_ptr.vmem [resolvable:$true] %s998_s7 }
  0x3d   : > { %1215 = vmatprep.subr.msk.mxu0 %vm565_vm0, %v400_v17  ;;  %1265 = vmatprep.subr.msk.mxu1 %vm565_vm0, %v400_v17  ;;  %308 = vst.msk [vmem:[#allocation2 + $0x10] sm:$0xff] %vm305_vm1, %v1450_v19  ;;  %309 = vst.msk [vmem:[#allocation2 + $0x18] sm:$0xff] %vm305_vm1, %v1450_v19  ;;  %s984_s22 = scalar_lea.sflag [#allocation5], %s1588_s11  ;;  %s1363_s24 = scalar_lea.vmem %s1708_s7, 32 }
  0x3e   : > { %v349_v8 = vsub.s32 %v346_v6, %v348_v7  ;;  %1216 = vmatpush3.msk.msra.mxu0 %vm565_vm0, %v400_v17  ;;  %1266 = vmatpush3.msk.msra.mxu1 %vm565_vm0, %v400_v17  ;;  %310 = vst.msk [vmem:[#allocation2 + $0x20] sm:$0xff] %vm305_vm1, %v1450_v19  ;;  %311 = vst.msk [vmem:[#allocation2 + $0x28] sm:$0xff] %vm305_vm1, %v1450_v19  ;;  %p1364_p8 = scmp.ne.s32.totalorder %s1708_s7, %s1363_s24  ;;  %p1768_p9 = scmp.ne.s32.totalorder %s1763_s28, 0 }
  0x3f   : > { %356 = vperm.xlu0 %1332, %v353_v2   ;;  %312 = vst.msk [vmem:[#allocation2 + $0x30] sm:$0xff] %vm305_vm1, %v1450_v19  ;;  %313 = vst.msk [vmem:[#allocation2 + $0x38] sm:$0xff] %vm305_vm1, %v1450_v19  ;;  %s1451_s18 = smov [#allocation6]  }
  0x40   : > { %314 = vst.msk [vmem:[#allocation2 + $0x40] sm:$0xff] %vm305_vm1, %v1450_v19  ;;  %315 = vst.msk [vmem:[#allocation2 + $0x48] sm:$0xff] %vm305_vm1, %v1450_v19  ;;  %p1365_p11 = pnand %p1364_p8, %p1768_p9  ;;  %s1367_s10 = sshll.u32 %s1451_s18, 4  ;;  %s1368_s10 = int_to_ptr.vmem [resolvable:$false] %s1367_s10 }
  0x41   : > { %316 = vst.msk [vmem:[#allocation2 + $0x50] sm:$0xff] %vm305_vm1, %v1450_v19  ;;  %317 = vst.msk [vmem:[#allocation2 + $0x58] sm:$0xff] %vm305_vm1, %v1450_v19  ;;  %s1369_s12 = scalar_lea.vmem %s1368_s10, 64  ;;  %p1370_p7 = scmp.lt.s32.totalorder %s1708_s7, %s1368_s10 }
  0x42   : > { %318 = vst.msk [vmem:[#allocation2 + $0x60] sm:$0xff] %vm305_vm1, %v1450_v19  ;;  %319 = vst.msk [vmem:[#allocation2 + $0x68] sm:$0xff] %vm305_vm1, %v1450_v19  ;;  %p1366_p0 = pneg %p1365_p11  ;;  %p1371_p13 = scmp.lt.s32.totalorder %s1369_s12, %s1363_s24 }
  0x43   : > { %320 = vst.msk [vmem:[#allocation2 + $0x70] sm:$0xff] %vm305_vm1, %v1450_v19  ;;  %321 = vst.msk [vmem:[#allocation2 + $0x78] sm:$0xff] %vm305_vm1, %v1450_v19  ;;  %v369_v52 = vld [vmem:[#allocation2 + $0x8] sm:$0xff]  ;;  %v368_v53 = vld [vmem:[#allocation2] sm:$0xff] }
  0x44   : > { %322 = vst.msk [vmem:[#allocation2 + $0x80] sm:$0xff] %vm305_vm1, %v1450_v19  ;;  %323 = vst.msk [vmem:[#allocation2 + $0x88] sm:$0xff] %vm305_vm1, %v1450_v19  ;;  %v371_v58 = vld [vmem:[#allocation2 + $0x18] sm:$0xff]  ;;  %v370_v59 = vld [vmem:[#allocation2 + $0x10] sm:$0xff]  ;;  %p1372_p3 = por %p1371_p13, %p1370_p7 }
  0x45   : > { %324 = vst.msk [vmem:[#allocation2 + $0x90] sm:$0xff] %vm305_vm1, %v1450_v19  ;;  %325 = vst.msk [vmem:[#allocation2 + $0x98] sm:$0xff] %vm305_vm1, %v1450_v19  ;;  %v373_v0 = vld [vmem:[#allocation2 + $0x28] sm:$0xff]  ;;  %v372_v1 = vld [vmem:[#allocation2 + $0x20] sm:$0xff] }
  0x46   : > { %326 = vst.msk [vmem:[#allocation2 + $0xa0] sm:$0xff] %vm305_vm1, %v1450_v19  ;;  %327 = vst.msk [vmem:[#allocation2 + $0xa8] sm:$0xff] %vm305_vm1, %v1450_v19  ;;  %p1373_p6 = pnand %p1372_p3, %p1366_p0 }
  0x47   : > { %328 = vst.msk [vmem:[#allocation2 + $0xb0] sm:$0xff] %vm305_vm1, %v1450_v19  ;;  %329 = vst.msk [vmem:[#allocation2 + $0xb8] sm:$0xff] %vm305_vm1, %v1450_v19 }
  0x48   : > { %330 = vst.msk [vmem:[#allocation2 + $0xc0] sm:$0xff] %vm305_vm1, %v1450_v19  ;;  %331 = vst.msk [vmem:[#allocation2 + $0xc8] sm:$0xff] %vm305_vm1, %v1450_v19 }
  0x49   : > { %332 = vst.msk [vmem:[#allocation2 + $0xd0] sm:$0xff] %vm305_vm1, %v1450_v19  ;;  %333 = vst.msk [vmem:[#allocation2 + $0xd8] sm:$0xff] %vm305_vm1, %v1450_v19 }
  0x4a   : > { %334 = vst.msk [vmem:[#allocation2 + $0xe0] sm:$0xff] %vm305_vm1, %v1450_v19  ;;  %335 = vst.msk [vmem:[#allocation2 + $0xe8] sm:$0xff] %vm305_vm1, %v1450_v19 }
  0x4b   : > { %336 = vst.msk [vmem:[#allocation2 + $0xf0] sm:$0xff] %vm305_vm1, %v1450_v19  ;;  %337 = vst.msk [vmem:[#allocation2 + $0xf8] sm:$0xff] %vm305_vm1, %v1450_v19  ;;  %v377_v19 = vld [vmem:[#allocation2 + $0x48] sm:$0xff] }
  0xba   : > { %v343_v9 = vpop.permute.xlu0 %342 }
  0xbb   : > { %v350_v10 = vrot.slane %v343_v9, %v349_v8 }
  0xbd   : > { %v352_v13 = vmul.f32 %v350_v10, %v338_v11 }
  0xbe   : > { %v357_v12 = vpop.permute.xlu0 %356 }
  0xbf   : > { %v364_v14 = vrot.slane %v357_v12, %v349_v8  ;;  %v375_v12 = vld [vmem:[#allocation2 + $0x38] sm:$0xff] }
  0xc1   : > { %v366_v15 = vadd.f32 %v364_v14, %v352_v13  ;;  %v374_v14 = vld [vmem:[#allocation2 + $0x30] sm:$0xff] }
  0xc3   : > { %v367_v16 = vmax.f32 %v366_v15, 0.0 }
  0xc5   : > { %404 = vxpose.xlu1.b32.start.end [1/1] (short) %v367_v16, 128  ;;  %v402_v18 = vcombine.high %v367_v16, %v367_v16 }
 0x102   : > { %436 = vxpose.xlu1.b32.start.end [1/1] (short) %v402_v18, 128 }
 0x145   : > { %v420_v20 = vpop.trf.xlu1 }
 0x146   : > { %1217 = vmatprep.mubr.msk.f32.mxu0 %vm468_vm2, %v420_v20  ;;  %v376_v20 = vld [vmem:[#allocation2 + $0x40] sm:$0xff] }
 0x149   : > { %v421_v21 = vpop.trf.xlu1 }
 0x14a   : > { %1218 = vmatmul.mubr.msk.f32.vlgmr.msra.gmra.mrb[0].mxu0 %vm468_vm2, %v421_v21 }
 0x14d   : > { %v422_v22 = vpop.trf.xlu1 }
 0x14e   : > { %1220 = vmatprep.mubr.msk.f32.mxu0 %vm468_vm2, %v422_v22 }
 0x151   : > { %v423_v23 = vpop.trf.xlu1 }
 0x152   : > { %1221 = vmatmul.mubr.msk.f32.gmra.mrb[2].mxu0 %vm468_vm2, %v423_v23 }
 0x155   : > { %v424_v24 = vpop.trf.xlu1 }
 0x156   : > { %1223 = vmatprep.mubr.msk.f32.mxu0 %vm468_vm2, %v424_v24 }
 0x159   : > { %v425_v25 = vpop.trf.xlu1 }
 0x15a   : > { %1224 = vmatmul.mubr.msk.f32.gmra.mrb[4].mxu0 %vm468_vm2, %v425_v25 }
 0x15d   : > { %v426_v26 = vpop.trf.xlu1 }
 0x15e   : > { %1226 = vmatprep.mubr.msk.f32.mxu0 %vm468_vm2, %v426_v26 }
 0x161   : > { %v427_v27 = vpop.trf.xlu1 }
 0x162   : > { %1227 = vmatmul.mubr.msk.f32.gmra.mrb[6].mxu0 %vm468_vm2, %v427_v27 }
 0x165   : > { %v428_v28 = vpop.trf.xlu1 }
 0x166   : > { %1229 = vmatprep.mubr.msk.f32.mxu0 %vm468_vm2, %v428_v28 }
 0x169   : > { %v429_v29 = vpop.trf.xlu1 }
 0x16a   : > { %1230 = vmatmul.mubr.msk.f32.gmra.mrb[8].mxu0 %vm468_vm2, %v429_v29 }
 0x16d   : > { %v430_v30 = vpop.trf.xlu1 }
 0x16e   : > { %1232 = vmatprep.mubr.msk.f32.mxu0 %vm468_vm2, %v430_v30 }
 0x171   : > { %v431_v31 = vpop.trf.xlu1 }
 0x172   : > { %1233 = vmatmul.mubr.msk.f32.gmra.mrb[10].mxu0 %vm468_vm2, %v431_v31  ;;  %v379_v31 = vld [vmem:[#allocation2 + $0x58] sm:$0xff] }
 0x175   : > { %v432_v32 = vpop.trf.xlu1 }
 0x176   : > { %1235 = vmatprep.mubr.msk.f32.mxu0 %vm468_vm2, %v432_v32 }
 0x179   : > { %v433_v33 = vpop.trf.xlu1 }
 0x17a   : > { %1236 = vmatmul.mubr.msk.f32.gmra.mrb[12].mxu0 %vm468_vm2, %v433_v33  ;;  %v378_v33 = vld [vmem:[#allocation2 + $0x50] sm:$0xff] }
 0x17d   : > { %v434_v34 = vpop.trf.xlu1 }
 0x17e   : > { %1238 = vmatprep.mubr.msk.f32.mxu0 %vm468_vm2, %v434_v34 }
 0x181   : > { %v435_v35 = vpop.trf.xlu1 }
 0x182   : > { %1239 = vmatmul.mubr.msk.f32.gmra.mrb[14].mxu0 %vm468_vm2, %v435_v35 }
 0x185   : > { %v452_v36 = vpop.trf.xlu1 }
 0x186   : > { %1241 = vmatprep.mubr.msk.f32.mxu1 %vm468_vm2, %v452_v36 }
 0x189   : > { %v453_v37 = vpop.trf.xlu1 }
 0x18a   : > { %1242 = vmatmul.mubr.msk.f32.vlgmr.msra.gmra.mrb[0].mxu1 %vm468_vm2, %v453_v37 }
 0x18d   : > { %v454_v38 = vpop.trf.xlu1 }
 0x18e   : > { %1244 = vmatprep.mubr.msk.f32.mxu1 %vm468_vm2, %v454_v38  ;;  %v381_v38 = vld [vmem:[#allocation2 + $0x68] sm:$0xff] }
 0x191   : > { %v455_v39 = vpop.trf.xlu1 }
 0x192   : > { %1245 = vmatmul.mubr.msk.f32.gmra.mrb[2].mxu1 %vm468_vm2, %v455_v39  ;;  %v380_v39 = vld [vmem:[#allocation2 + $0x60] sm:$0xff] }
 0x195   : > { %v456_v40 = vpop.trf.xlu1 }
 0x196   : > { %1247 = vmatprep.mubr.msk.f32.mxu1 %vm468_vm2, %v456_v40 }
 0x199   : > { %v457_v41 = vpop.trf.xlu1 }
 0x19a   : > { %1248 = vmatmul.mubr.msk.f32.gmra.mrb[4].mxu1 %vm468_vm2, %v457_v41 }
 0x19d   : > { %v458_v42 = vpop.trf.xlu1 }
 0x19e   : > { %1250 = vmatprep.mubr.msk.f32.mxu1 %vm468_vm2, %v458_v42 }
 0x1a1   : > { %v459_v43 = vpop.trf.xlu1 }
 0x1a2   : > { %1251 = vmatmul.mubr.msk.f32.gmra.mrb[6].mxu1 %vm468_vm2, %v459_v43 }
 0x1a5   : > { %v460_v44 = vpop.trf.xlu1 }
 0x1a6   : > { %1253 = vmatprep.mubr.msk.f32.mxu1 %vm468_vm2, %v460_v44 }
 0x1a9   : > { %v461_v45 = vpop.trf.xlu1 }
 0x1aa   : > { %1254 = vmatmul.mubr.msk.f32.gmra.mrb[8].mxu1 %vm468_vm2, %v461_v45 }
 0x1ad   : > { %v462_v46 = vpop.trf.xlu1 }
 0x1ae   : > { %1256 = vmatprep.mubr.msk.f32.mxu1 %vm468_vm2, %v462_v46 }
 0x1b1   : > { %v463_v47 = vpop.trf.xlu1 }
 0x1b2   : > { %1257 = vmatmul.mubr.msk.f32.gmra.mrb[10].mxu1 %vm468_vm2, %v463_v47 }
 0x1b5   : > { %v464_v48 = vpop.trf.xlu1 }
 0x1b6   : > { %1259 = vmatprep.mubr.msk.f32.mxu1 %vm468_vm2, %v464_v48 }
 0x1b9   : > { %v465_v49 = vpop.trf.xlu1 }
 0x1ba   : > { %1260 = vmatmul.mubr.msk.f32.gmra.mrb[12].mxu1 %vm468_vm2, %v465_v49 }
 0x1bd   : > { %v466_v50 = vpop.trf.xlu1 }
 0x1be   : > { %1262 = vmatprep.mubr.msk.f32.mxu1 %vm468_vm2, %v466_v50  ;;  %v383_v50 = vld [vmem:[#allocation2 + $0x78] sm:$0xff] }
 0x1c1   : > { %v467_v51 = vpop.trf.xlu1 }
 0x1c2   : > { %1263 = vmatmul.mubr.msk.f32.gmra.mrb[14].mxu1 %vm468_vm2, %v467_v51 }
 0x21d   : > { %v1219_v54 = vpop.f32.mrb[0].mxu0 }
 0x21e   : > { %v795_v55 = vadd.f32 %v1219_v54, %v369_v52  ;;  %v635_v56 = vpop.f32.mrb[1].mxu0  ;;  %v382_v52 = vld [vmem:[#allocation2 + $0x70] sm:$0xff] }
 0x21f   : > { %v794_v57 = vadd.f32 %v635_v56, %v368_v53 }
 0x220   : > { %828 = vst.msk [vmem:[#allocation2 + $0x8] sm:$0xff] %vm305_vm1, %v795_v55 }
 0x221   : > { %827 = vst.msk [vmem:[#allocation2] sm:$0xff] %vm305_vm1, %v794_v57  ;;  %v385_v57 = vld [vmem:[#allocation2 + $0x88] sm:$0xff] }
 0x225   : > { %v1222_v60 = vpop.f32.mrb[2].mxu0 }
 0x226   : > { %v797_v61 = vadd.f32 %v1222_v60, %v371_v58  ;;  %v645_v62 = vpop.f32.mrb[3].mxu0  ;;  %v384_v58 = vld [vmem:[#allocation2 + $0x80] sm:$0xff] }
 0x227   : > { %v796_v63 = vadd.f32 %v645_v62, %v370_v59 }
 0x228   : > { %830 = vst.msk [vmem:[#allocation2 + $0x18] sm:$0xff] %vm305_vm1, %v797_v61  ;;  %v862_v5 = vld [vmem:[#allocation2] ss:$2 sm:$0xff]  ;;  %v894_v6 = vld [vmem:[#allocation2 + $0x1] ss:$2 sm:$0xff] }
 0x229   : > { %829 = vst.msk [vmem:[#allocation2 + $0x10] sm:$0xff] %vm305_vm1, %v796_v63  ;;  %v925_v10 = vadd.f32 %v894_v6, %v862_v5  ;;  %v387_v5 = vld [vmem:[#allocation2 + $0x98] sm:$0xff] }
 0x22d   : > { %v1225_v2 = vpop.f32.mrb[4].mxu0 }
 0x22e   : > { %v799_v3 = vadd.f32 %v1225_v2, %v373_v0  ;;  %v655_v4 = vpop.f32.mrb[5].mxu0 }
 0x22f   : > { %v798_v7 = vadd.f32 %v655_v4, %v372_v1 }
 0x230   : > { %832 = vst.msk [vmem:[#allocation2 + $0x28] sm:$0xff] %vm305_vm1, %v799_v3  ;;  %v864_v8 = vld [vmem:[#allocation2 + $0x10] ss:$2 sm:$0xff]  ;;  %v896_v9 = vld [vmem:[#allocation2 + $0x11] ss:$2 sm:$0xff] }
 0x231   : > { %831 = vst.msk [vmem:[#allocation2 + $0x20] sm:$0xff] %vm305_vm1, %v798_v7  ;;  %v926_v11 = vadd.f32 %v896_v9, %v864_v8  ;;  %v386_v7 = vld [vmem:[#allocation2 + $0x90] sm:$0xff] }
 0x233   : > { %v941_v13 = vadd.f32 %v926_v11, %v925_v10 }
 0x235   : > { %v1228_v15 = vpop.f32.mrb[6].mxu0  ;;  %949 = vxpose.xlu0.b32.start [1/8] (short) (narrow) %v941_v13, 8  ;;  %v388_v13 = vld [vmem:[#allocation2 + $0xa0] sm:$0xff] }
 0x236   : > { %v801_v16 = vadd.f32 %v1228_v15, %v375_v12  ;;  %v665_v17 = vpop.f32.mrb[7].mxu0  ;;  %v389_v12 = vld [vmem:[#allocation2 + $0xa8] sm:$0xff] }
 0x237   : > { %v800_v18 = vadd.f32 %v665_v17, %v374_v14 }
 0x238   : > { %834 = vst.msk [vmem:[#allocation2 + $0x38] sm:$0xff] %vm305_vm1, %v801_v16  ;;  %v866_v24 = vld [vmem:[#allocation2 + $0x20] ss:$2 sm:$0xff]  ;;  %v898_v25 = vld [vmem:[#allocation2 + $0x21] ss:$2 sm:$0xff] }
 0x239   : > { %833 = vst.msk [vmem:[#allocation2 + $0x30] sm:$0xff] %vm305_vm1, %v800_v18  ;;  %v927_v29 = vadd.f32 %v898_v25, %v866_v24  ;;  %v391_v24 = vld [vmem:[#allocation2 + $0xb8] sm:$0xff] }
 0x23d   : > { %v1231_v21 = vpop.f32.mrb[8].mxu0 }
 0x23e   : > { %v803_v22 = vadd.f32 %v1231_v21, %v377_v19  ;;  %v675_v23 = vpop.f32.mrb[9].mxu0 }
 0x23f   : > { %v802_v26 = vadd.f32 %v675_v23, %v376_v20 }
 0x240   : > { %836 = vst.msk [vmem:[#allocation2 + $0x48] sm:$0xff] %vm305_vm1, %v803_v22  ;;  %v868_v27 = vld [vmem:[#allocation2 + $0x30] ss:$2 sm:$0xff]  ;;  %v900_v28 = vld [vmem:[#allocation2 + $0x31] ss:$2 sm:$0xff] }
 0x241   : > { %835 = vst.msk [vmem:[#allocation2 + $0x40] sm:$0xff] %vm305_vm1, %v802_v26  ;;  %v928_v30 = vadd.f32 %v900_v28, %v868_v27  ;;  %v390_v26 = vld [vmem:[#allocation2 + $0xb0] sm:$0xff] }
 0x243   : > { %v942_v32 = vadd.f32 %v928_v30, %v927_v29 }
 0x245   : > { %v1234_v34 = vpop.f32.mrb[10].mxu0  ;;  %950 = vxpose.xlu0.b32.cont [2/8] (short) (narrow) %v942_v32, 8  ;;  %v392_v32 = vld [vmem:[#allocation2 + $0xc0] sm:$0xff] }
 0x246   : > { %v805_v35 = vadd.f32 %v1234_v34, %v379_v31  ;;  %v685_v36 = vpop.f32.mrb[11].mxu0  ;;  %v393_v31 = vld [vmem:[#allocation2 + $0xc8] sm:$0xff] }
 0x247   : > { %v804_v37 = vadd.f32 %v685_v36, %v378_v33 }
 0x248   : > { %838 = vst.msk [vmem:[#allocation2 + $0x58] sm:$0xff] %vm305_vm1, %v805_v35  ;;  %v870_v43 = vld [vmem:[#allocation2 + $0x40] ss:$2 sm:$0xff]  ;;  %v902_v44 = vld [vmem:[#allocation2 + $0x41] ss:$2 sm:$0xff] }
 0x249   : > { %837 = vst.msk [vmem:[#allocation2 + $0x50] sm:$0xff] %vm305_vm1, %v804_v37  ;;  %v929_v48 = vadd.f32 %v902_v44, %v870_v43  ;;  %v395_v43 = vld [vmem:[#allocation2 + $0xd8] sm:$0xff] }
 0x24d   : > { %v1237_v40 = vpop.f32.mrb[12].mxu0 }
 0x24e   : > { %v807_v41 = vadd.f32 %v1237_v40, %v381_v38  ;;  %v695_v42 = vpop.f32.mrb[13].mxu0 }
 0x24f   : > { %v806_v45 = vadd.f32 %v695_v42, %v380_v39 }
 0x250   : > { %840 = vst.msk [vmem:[#allocation2 + $0x68] sm:$0xff] %vm305_vm1, %v807_v41  ;;  %v872_v46 = vld [vmem:[#allocation2 + $0x50] ss:$2 sm:$0xff]  ;;  %v904_v47 = vld [vmem:[#allocation2 + $0x51] ss:$2 sm:$0xff] }
 0x251   : > { %839 = vst.msk [vmem:[#allocation2 + $0x60] sm:$0xff] %vm305_vm1, %v806_v45  ;;  %v930_v49 = vadd.f32 %v904_v47, %v872_v46  ;;  %v394_v45 = vld [vmem:[#allocation2 + $0xd0] sm:$0xff] }
 0x253   : > { %v943_v51 = vadd.f32 %v930_v49, %v929_v48 }
 0x255   : > { %v1240_v53 = vpop.f32.mrb[14].mxu0  ;;  %951 = vxpose.xlu0.b32.cont [3/8] (short) (narrow) %v943_v51, 8  ;;  %v396_v51 = vld [vmem:[#allocation2 + $0xe0] sm:$0xff] }
 0x256   : > { %v809_v54 = vadd.f32 %v1240_v53, %v383_v50  ;;  %v705_v55 = vpop.f32.mrb[15].mxu0  ;;  %v397_v50 = vld [vmem:[#allocation2 + $0xe8] sm:$0xff] }
 0x257   : > { %v808_v56 = vadd.f32 %v705_v55, %v382_v52 }
 0x258   : > { %842 = vst.msk [vmem:[#allocation2 + $0x78] sm:$0xff] %vm305_vm1, %v809_v54  ;;  %v874_v62 = vld [vmem:[#allocation2 + $0x60] ss:$2 sm:$0xff]  ;;  %v906_v63 = vld [vmem:[#allocation2 + $0x61] ss:$2 sm:$0xff] }
 0x259   : > { %841 = vst.msk [vmem:[#allocation2 + $0x70] sm:$0xff] %vm305_vm1, %v808_v56  ;;  %v931_v3 = vadd.f32 %v906_v63, %v874_v62  ;;  %v399_v62 = vld [vmem:[#allocation2 + $0xf8] sm:$0xff] }
 0x25d   : > { %v1243_v59 = vpop.f32.mrb[0].mxu1 }
 0x25e   : > { %v811_v60 = vadd.f32 %v1243_v59, %v385_v57  ;;  %v715_v61 = vpop.f32.mrb[1].mxu1 }
 0x25f   : > { %v810_v0 = vadd.f32 %v715_v61, %v384_v58 }
 0x260   : > { %844 = vst.msk [vmem:[#allocation2 + $0x88] sm:$0xff] %vm305_vm1, %v811_v60  ;;  %v876_v1 = vld [vmem:[#allocation2 + $0x70] ss:$2 sm:$0xff]  ;;  %v908_v2 = vld [vmem:[#allocation2 + $0x71] ss:$2 sm:$0xff] }
 0x261   : > { %843 = vst.msk [vmem:[#allocation2 + $0x80] sm:$0xff] %vm305_vm1, %v810_v0  ;;  %v932_v4 = vadd.f32 %v908_v2, %v876_v1  ;;  %v398_v0 = vld [vmem:[#allocation2 + $0xf0] sm:$0xff] }
 0x263   : > { %v944_v6 = vadd.f32 %v932_v4, %v931_v3 }
 0x265   : > { %v1246_v8 = vpop.f32.mrb[2].mxu1  ;;  %952 = vxpose.xlu0.b32.cont [4/8] (short) (narrow) %v944_v6, 8 }
 0x266   : > { %v813_v9 = vadd.f32 %v1246_v8, %v387_v5  ;;  %v725_v10 = vpop.f32.mrb[3].mxu1 }
 0x267   : > { %v812_v11 = vadd.f32 %v725_v10, %v386_v7 }
 0x268   : > { %846 = vst.msk [vmem:[#allocation2 + $0x98] sm:$0xff] %vm305_vm1, %v813_v9  ;;  %v878_v17 = vld [vmem:[#allocation2 + $0x80] ss:$2 sm:$0xff]  ;;  %v910_v18 = vld [vmem:[#allocation2 + $0x81] ss:$2 sm:$0xff] }
 0x269   : > { %845 = vst.msk [vmem:[#allocation2 + $0x90] sm:$0xff] %vm305_vm1, %v812_v11  ;;  %v933_v22 = vadd.f32 %v910_v18, %v878_v17 }
 0x26d   : > { %v1249_v14 = vpop.f32.mrb[4].mxu1 }
 0x26e   : > { %v815_v15 = vadd.f32 %v1249_v14, %v389_v12  ;;  %v735_v16 = vpop.f32.mrb[5].mxu1 }
 0x26f   : > { %v814_v19 = vadd.f32 %v735_v16, %v388_v13 }
 0x270   : > { %848 = vst.msk [vmem:[#allocation2 + $0xa8] sm:$0xff] %vm305_vm1, %v815_v15  ;;  %v880_v20 = vld [vmem:[#allocation2 + $0x90] ss:$2 sm:$0xff]  ;;  %v912_v21 = vld [vmem:[#allocation2 + $0x91] ss:$2 sm:$0xff] }
 0x271   : > { %847 = vst.msk [vmem:[#allocation2 + $0xa0] sm:$0xff] %vm305_vm1, %v814_v19  ;;  %v934_v23 = vadd.f32 %v912_v21, %v880_v20 }
 0x273   : > { %v945_v25 = vadd.f32 %v934_v23, %v933_v22 }
 0x275   : > { %v1252_v27 = vpop.f32.mrb[6].mxu1  ;;  %953 = vxpose.xlu0.b32.cont [5/8] (short) (narrow) %v945_v25, 8 }
 0x276   : > { %v817_v28 = vadd.f32 %v1252_v27, %v391_v24  ;;  %v745_v29 = vpop.f32.mrb[7].mxu1 }
 0x277   : > { %v816_v30 = vadd.f32 %v745_v29, %v390_v26 }
 0x278   : > { %850 = vst.msk [vmem:[#allocation2 + $0xb8] sm:$0xff] %vm305_vm1, %v817_v28  ;;  %v882_v36 = vld [vmem:[#allocation2 + $0xa0] ss:$2 sm:$0xff]  ;;  %v914_v37 = vld [vmem:[#allocation2 + $0xa1] ss:$2 sm:$0xff] }
 0x279   : > { %849 = vst.msk [vmem:[#allocation2 + $0xb0] sm:$0xff] %vm305_vm1, %v816_v30  ;;  %v935_v41 = vadd.f32 %v914_v37, %v882_v36 }
 0x27d   : > { %v1255_v33 = vpop.f32.mrb[8].mxu1 }
 0x27e   : > { %v819_v34 = vadd.f32 %v1255_v33, %v393_v31  ;;  %v755_v35 = vpop.f32.mrb[9].mxu1 }
 0x27f   : > { %v818_v38 = vadd.f32 %v755_v35, %v392_v32 }
 0x280   : > { %852 = vst.msk [vmem:[#allocation2 + $0xc8] sm:$0xff] %vm305_vm1, %v819_v34  ;;  %v884_v39 = vld [vmem:[#allocation2 + $0xb0] ss:$2 sm:$0xff]  ;;  %v916_v40 = vld [vmem:[#allocation2 + $0xb1] ss:$2 sm:$0xff] }
 0x281   : > { %851 = vst.msk [vmem:[#allocation2 + $0xc0] sm:$0xff] %vm305_vm1, %v818_v38  ;;  %v936_v42 = vadd.f32 %v916_v40, %v884_v39 }
 0x283   : > { %v946_v44 = vadd.f32 %v936_v42, %v935_v41 }
 0x285   : > { %v1258_v46 = vpop.f32.mrb[10].mxu1  ;;  %954 = vxpose.xlu0.b32.cont [6/8] (short) (narrow) %v946_v44, 8 }
 0x286   : > { %v821_v47 = vadd.f32 %v1258_v46, %v395_v43  ;;  %v765_v48 = vpop.f32.mrb[11].mxu1 }
 0x287   : > { %v820_v49 = vadd.f32 %v765_v48, %v394_v45 }
 0x288   : > { %854 = vst.msk [vmem:[#allocation2 + $0xd8] sm:$0xff] %vm305_vm1, %v821_v47  ;;  %v886_v55 = vld [vmem:[#allocation2 + $0xc0] ss:$2 sm:$0xff]  ;;  %v918_v56 = vld [vmem:[#allocation2 + $0xc1] ss:$2 sm:$0xff] }
 0x289   : > { %853 = vst.msk [vmem:[#allocation2 + $0xd0] sm:$0xff] %vm305_vm1, %v820_v49  ;;  %v937_v60 = vadd.f32 %v918_v56, %v886_v55 }
 0x28d   : > { %v1261_v52 = vpop.f32.mrb[12].mxu1 }
 0x28e   : > { %v823_v53 = vadd.f32 %v1261_v52, %v397_v50  ;;  %v775_v54 = vpop.f32.mrb[13].mxu1 }
 0x28f   : > { %v822_v57 = vadd.f32 %v775_v54, %v396_v51 }
 0x290   : > { %856 = vst.msk [vmem:[#allocation2 + $0xe8] sm:$0xff] %vm305_vm1, %v823_v53  ;;  %v888_v58 = vld [vmem:[#allocation2 + $0xd0] ss:$2 sm:$0xff]  ;;  %v920_v59 = vld [vmem:[#allocation2 + $0xd1] ss:$2 sm:$0xff] }
 0x291   : > { %855 = vst.msk [vmem:[#allocation2 + $0xe0] sm:$0xff] %vm305_vm1, %v822_v57  ;;  %v938_v61 = vadd.f32 %v920_v59, %v888_v58 }
 0x293   : > { %v947_v63 = vadd.f32 %v938_v61, %v937_v60 }
 0x295   : > { %v1264_v1 = vpop.f32.mrb[14].mxu1  ;;  %955 = vxpose.xlu0.b32.cont [7/8] (short) (narrow) %v947_v63, 8 }
 0x296   : > { %v825_v2 = vadd.f32 %v1264_v1, %v399_v62  ;;  %v785_v3 = vpop.f32.mrb[15].mxu1 }
 0x297   : > { %v824_v4 = vadd.f32 %v785_v3, %v398_v0 }
 0x298   : > { %858 = vst.msk [vmem:[#allocation2 + $0xf8] sm:$0xff] %vm305_vm1, %v825_v2  ;;  %v890_v5 = vld [vmem:[#allocation2 + $0xe0] ss:$2 sm:$0xff]  ;;  %v922_v6 = vld [vmem:[#allocation2 + $0xe1] ss:$2 sm:$0xff] }
 0x299   : > { %857 = vst.msk [vmem:[#allocation2 + $0xf0] sm:$0xff] %vm305_vm1, %v824_v4  ;;  %v939_v9 = vadd.f32 %v922_v6, %v890_v5 }
 0x2a0   : > { %v892_v7 = vld [vmem:[#allocation2 + $0xf0] ss:$2 sm:$0xff]  ;;  %v924_v8 = vld [vmem:[#allocation2 + $0xf1] ss:$2 sm:$0xff] }
 0x2a1   : > { %v940_v10 = vadd.f32 %v924_v8, %v892_v7 }
 0x2a3   : > { %v948_v11 = vadd.f32 %v940_v10, %v939_v9 }
 0x2a5   : > { %956 = vxpose.xlu0.b32.end [8/8] (short) (narrow) %v948_v11, 8 }
 0x309   : > { %v965_v12 = vpop.trf.xlu0 }
 0x30a   : > { %982 = vst.msk [vmem:[%s285_s5] sm:$0x3] %vm981_vm3, %v965_v12 }
 0x30b   : > { %1376 = shalt.err (!%p1373_p6)
}
 0x30c   : > { %s1377_s11 = scalar_lea.hbm %s1706_s21, 32  ;;  %s1381_s27 = scalar_lea.hbm %s1759_s4, 64 }
 0x30d   : > { %p1378_p4 = scmp.ne.s32.totalorder %s1706_s21, %s1377_s11  ;;  %p1382_p1 = scmp.lt.u32.totalorder %s1706_s21, %s1759_s4 }
 0x30e   : > { %p1383_p2 = scmp.lt.u32.totalorder %s1381_s27, %s1377_s11  ;;  %p1385_p8 = scmp.lt.u32.totalorder %s1377_s11, %s1706_s21 }
 0x30f   : > { %p1379_p10 = pnand %p1378_p4, %p1768_p9 }
 0x310   : > { %p1384_p5 = por %p1383_p2, %p1382_p1 }
 0x311   : > { %p1380_p12 = pneg %p1379_p10 }
 0x312   : > { %p1386_p11 = por %p1385_p8, %p1384_p5 }
 0x314   : > { %p1387_p0 = pnand %p1386_p11, %p1380_p12 }
 0x316   : > { %1390 = shalt.err (!%p1387_p0)
}
 0x317   : > { %1269 = dma.vmem_to_hbm [thread:$0]  (%p1768_p9), %s1708_s7, 32, %s1706_s21, %s984_s22  }
 0x318 PF: > { %s1010_s6 = sand.u32 1, %s1425_s15   ;;  %p1769_p7 = scmp.ne.s32.totalorder %s1764_s30, 0 }
 0x319   : > { %p1770_p13 = scmp.ge.s32.totalorder %s1445_s20, 2  ;;  %s1011_s5 = scalar_lea.sflag [#allocation5], %s1010_s6 }
 0x31b   : > { %p1276_p3 = pnand %p1770_p13, %p1769_p7 }
 0x31d   : > { %1420 = dma.done.wait (!%p1276_p3), %s1011_s5, 32  }
 0x31e   : > { %1422 = vsyncadd (!%p1276_p3), %s1011_s5, 4294967264  ;;  %s20_s20 = sadd.s32 1, %s1445_s20   ;;  %s1771_s15 = smov %s1429_s16 }
 0x31f   : > { %p17_p6 = scmp.ge.s32.totalorder %s20_s20, 4   ;;  %s1772_s16 = smov %s1433_s17 }
 0x320   : > { %s1773_s17 = smov %s1533_s29  ;;  %s1774_s18 = smov %s1441_s19 }
 0x321   : > { %s1775_s19 = smov %s1777_s23  ;;  %19 = sbr.rel (!%p17_p6) target bundleno = 6 (0x6), region = 129 }
 0x328   :  { %1016 = vsyncpa [#allocation4], 1 }
 0x329   :  { %1018 = vsyncpa [#allocation4 + $0x1], 1 }
 0x32a   :  { %1019 = vsyncpa [#allocation5], 1 }
 0x32b   :  { %1021 = vsyncpa [#allocation5 + $0x1], 1 }

</bundles_post_ra>
